<compile_context>
chip_gen: v7x
topology: tpu7x:2x2x1
jax: 0.10.0
libtpu: 0.0.40
codegen_flags: <defaults>
</compile_context>

<pallas_src>
import jax
import jax.numpy as jnp
from jax.experimental import pallas as pl
from jax.experimental.pallas import tpu as pltpu

N_CLASSES = 20
D_IN, D_H1, D_H2 = 2048, 200, 50
N_OUT_PAD = 128  # lane-dense logits block; sliced back to N_CLASSES in wrapper


def mlp_kernel(x_ref, w1_ref, b1_ref, w2_ref, b2_ref, w3_ref, b3_ref, o_ref):
    # fc1: bf16 cast done in-kernel (hidden under the x DMA), f32 accumulate.
    x_bf = x_ref[...].astype(jnp.bfloat16)
    h1 = jnp.tanh(
        jnp.dot(x_bf, w1_ref[...], preferred_element_type=jnp.float32)
        + b1_ref[...]
    )
    # dropout (eval mode) -> identity
    # TODO(synk): training-mode dropout (pltpu.prng_random_bits mask + 1/(1-p) scale) not emitted.
    h2 = jnp.maximum(
        jnp.dot(h1.astype(jnp.bfloat16), w2_ref[...],
                preferred_element_type=jnp.float32)
        + b2_ref[...],
        0.0,
    )
    # dropout (eval mode) -> identity
    # fc3 (logits, lane-padded to 128; padded columns are zero by construction)
    o_ref[...] = (
        jnp.dot(h2.astype(jnp.bfloat16), w3_ref[...],
                preferred_element_type=jnp.float32)
        + b3_ref[...]
    ).astype(o_ref.dtype)


def _round_up(x, m):
    return (x + m - 1) // m * m


def net_forward(x, params, tb=1024):
    """x: [B, 2048] (f32 or bf16).  params from init_params: weights bf16,
    stored [in, out] (transposed vs torch); w3/b3 lane-padded to 128."""
    w1, b1, w2, b2, w3, b3 = params
    B = x.shape[0]

    # Batch tile: multiple of 8 sublanes; when the batch is big enough, force
    # >=2 grid steps so the "parallel" axis can shard across both TensorCores
    # on v7x.
    if B <= 8:
        TB = _round_up(max(B, 1), 8)
    else:
        TB = min(tb, _round_up((B + 1) // 2, 8))

    grid = (pl.cdiv(B, TB),)  # ragged last block handled by Pallas (no jnp.pad)

    out = pl.pallas_call(
        mlp_kernel,
        out_shape=jax.ShapeDtypeStruct((B, N_OUT_PAD), jnp.float32),
        grid=grid,
        in_specs=[
            # x tile: streams over the grid (software pipelined / double-buffered)
            pl.BlockSpec((TB, D_IN), lambda i: (i, 0)),
            # weights & biases: constant block index -> VMEM-resident across steps
            pl.BlockSpec((D_IN, D_H1), lambda i: (0, 0)),        # w1 [2048,200] bf16
            pl.BlockSpec((1, D_H1), lambda i: (0, 0)),           # b1 [1,200]    f32
            pl.BlockSpec((D_H1, D_H2), lambda i: (0, 0)),        # w2 [200,50]   bf16
            pl.BlockSpec((1, D_H2), lambda i: (0, 0)),           # b2 [1,50]     f32
            pl.BlockSpec((D_H2, N_OUT_PAD), lambda i: (0, 0)),   # w3 [50,128]   bf16
            pl.BlockSpec((1, N_OUT_PAD), lambda i: (0, 0)),      # b3 [1,128]    f32
        ],
        out_specs=pl.BlockSpec((TB, N_OUT_PAD), lambda i: (i, 0)),
        compiler_params=pltpu.CompilerParams(
            dimension_semantics=("parallel",),
            vmem_limit_bytes=48 << 20,   # room for TB=1024 f32 x double-buffer
        ),
    )(x, w1, b1, w2, b2, w3, b3)

    return out[:, :N_CLASSES]


def init_params(key):
    """PyTorch-style Linear init: U(-1/sqrt(fan_in), 1/sqrt(fan_in)).
    Weights are cast to bf16 once here; logits path lane-padded to 128."""
    def linear(key, fan_in, fan_out):
        kw, kb = jax.random.split(key)
        bound = 1.0 / jnp.sqrt(fan_in)
        # stored as [in, out] (transposed vs. torch's [out, in])
        w = jax.random.uniform(kw, (fan_in, fan_out), jnp.float32, -bound, bound)
        b = jax.random.uniform(kb, (1, fan_out), jnp.float32, -bound, bound)
        return w, b

    k1, k2, k3 = jax.random.split(key, 3)
    w1, b1 = linear(k1, D_IN, D_H1)
    w2, b2 = linear(k2, D_H1, D_H2)
    w3, b3 = linear(k3, D_H2, N_CLASSES)

    w3p = jnp.zeros((D_H2, N_OUT_PAD), jnp.float32).at[:, :N_CLASSES].set(w3)
    b3p = jnp.zeros((1, N_OUT_PAD), jnp.float32).at[:, :N_CLASSES].set(b3)

    return (w1.astype(jnp.bfloat16), b1,
            w2.astype(jnp.bfloat16), b2,
            w3p.astype(jnp.bfloat16), b3p)


def _reference(x, params):
    """Pure-JAX reference using the same bf16 weights / intermediates (f32 math)."""
    w1, b1, w2, b2, w3, b3 = params
    f32 = jnp.float32
    q = lambda a: a.astype(jnp.bfloat16).astype(f32)
    h1 = jnp.tanh(q(x) @ w1.astype(f32) + b1)
    h2 = jnp.maximum(q(h1) @ w2.astype(f32) + b2, 0.0)
    return (q(h2) @ w3.astype(f32) + b3)[:, :N_CLASSES]


if __name__ == "__main__":
    key = jax.random.PRNGKey(0)
    k_params, k_x1, k_x2 = jax.random.split(key, 3)
    params = init_params(k_params)

    # Small batch: single grid step.
    B1 = 8
    x1 = jax.random.normal(k_x1, (B1, D_IN), jnp.float32)
    out1 = net_forward(x1, params)
    jax.block_until_ready(out1)
    assert out1.shape == (B1, N_CLASSES)
    assert jnp.allclose(out1, _reference(x1, params), atol=2e-2, rtol=2e-2)

    # Non-multiple batch with a multi-tile grid: exercises the ragged last
    # block (padded reads, masked output writes) with no wrapper-side pad.
    B2 = 300
    x2 = jax.random.normal(k_x2, (B2, D_IN), jnp.float32)
    out2 = net_forward(x2, params, tb=128)   # TB=128 -> grid of 3 batch tiles
    jax.block_until_ready(out2)
    assert out2.shape == (B2, N_CLASSES)
    assert jnp.allclose(out2, _reference(x2, params), atol=2e-2, rtol=2e-2)

    print("KERNEL_OK")
</pallas_src>

<mosaic_0001>
module attributes {stable_mosaic.version = 11 : i64} {
  func.func @mlp_kernel(%arg0: i32, %arg1: memref<8x2048xf32, #tpu.memory_space<vmem>>, %arg2: memref<2048x200xbf16, #tpu.memory_space<vmem>>, %arg3: memref<1x200xf32, #tpu.memory_space<vmem>>, %arg4: memref<200x50xbf16, #tpu.memory_space<vmem>>, %arg5: memref<1x50xf32, #tpu.memory_space<vmem>>, %arg6: memref<50x128xbf16, #tpu.memory_space<vmem>>, %arg7: memref<1x128xf32, #tpu.memory_space<vmem>>, %arg8: memref<8x128xf32, #tpu.memory_space<vmem>>) attributes {dimension_semantics = [#tpu.dimension_semantics<parallel>], iteration_bounds = array<i64: 1>, scalar_prefetch = 0 : i64, scratch_operands = 0 : i64, tpu.core_type = #tpu.core_type<tc>, window_params = [{transform_indices = @transform_0, window_bounds = array<i64: 8, 2048>}, {pipeline_mode = #tpu.pipeline_mode<synchronous>, transform_indices = @transform_1, window_bounds = array<i64: 2048, 200>}, {pipeline_mode = #tpu.pipeline_mode<synchronous>, transform_indices = @transform_2, window_bounds = array<i64: 1, 200>}, {pipeline_mode = #tpu.pipeline_mode<synchronous>, transform_indices = @transform_3, window_bounds = array<i64: 200, 50>}, {pipeline_mode = #tpu.pipeline_mode<synchronous>, transform_indices = @transform_4, window_bounds = array<i64: 1, 50>}, {pipeline_mode = #tpu.pipeline_mode<synchronous>, transform_indices = @transform_5, window_bounds = array<i64: 50, 128>}, {pipeline_mode = #tpu.pipeline_mode<synchronous>, transform_indices = @transform_6, window_bounds = array<i64: 1, 128>}, {transform_indices = @transform_7, window_bounds = array<i64: 8, 128>}]} {
    %c0 = arith.constant 0 : index
    %c0_0 = arith.constant 0 : index
    %0 = vector.load %arg1[%c0, %c0_0] : memref<8x2048xf32, #tpu.memory_space<vmem>>, vector<8x2048xf32>
    %1 = arith.truncf %0 : vector<8x2048xf32> to vector<8x2048xbf16>
    %c0_1 = arith.constant 0 : index
    %c0_2 = arith.constant 0 : index
    %2 = vector.load %arg2[%c0_1, %c0_2] : memref<2048x200xbf16, #tpu.memory_space<vmem>>, vector<2048x200xbf16>
    %cst = arith.constant dense<0.000000e+00> : vector<8x200xf32>
    %3 = tpu.matmul %1, %2, %cst {dimension_numbers = #tpu.dot_dimension_numbers<[1], [0], [0], [1], [0, 0, 1, 1], [], []>} : vector<8x2048xbf16>, vector<2048x200xbf16>, vector<8x200xf32> -> vector<8x200xf32>
    %c0_3 = arith.constant 0 : index
    %c0_4 = arith.constant 0 : index
    %4 = vector.load %arg3[%c0_3, %c0_4] : memref<1x200xf32, #tpu.memory_space<vmem>>, vector<1x200xf32>
    %5 = vector.broadcast %4 : vector<1x200xf32> to vector<8x200xf32>
    %6 = arith.addf %3, %5 : vector<8x200xf32>
    %7 = math.tanh %6 : vector<8x200xf32>
    %8 = arith.truncf %7 : vector<8x200xf32> to vector<8x200xbf16>
    %c0_5 = arith.constant 0 : index
    %c0_6 = arith.constant 0 : index
    %9 = vector.load %arg4[%c0_5, %c0_6] : memref<200x50xbf16, #tpu.memory_space<vmem>>, vector<200x50xbf16>
    %cst_7 = arith.constant dense<0.000000e+00> : vector<8x50xf32>
    %10 = tpu.matmul %8, %9, %cst_7 {dimension_numbers = #tpu.dot_dimension_numbers<[1], [0], [0], [1], [0, 0, 1, 1], [], []>} : vector<8x200xbf16>, vector<200x50xbf16>, vector<8x50xf32> -> vector<8x50xf32>
    %c0_8 = arith.constant 0 : index
    %c0_9 = arith.constant 0 : index
    %11 = vector.load %arg5[%c0_8, %c0_9] : memref<1x50xf32, #tpu.memory_space<vmem>>, vector<1x50xf32>
    %12 = vector.broadcast %11 : vector<1x50xf32> to vector<8x50xf32>
    %13 = arith.addf %10, %12 : vector<8x50xf32>
    %cst_10 = arith.constant 0.000000e+00 : f32
    %14 = vector.broadcast %cst_10 : f32 to vector<8x50xf32>
    %15 = arith.maximumf %13, %14 : vector<8x50xf32>
    %16 = arith.truncf %15 : vector<8x50xf32> to vector<8x50xbf16>
    %c0_11 = arith.constant 0 : index
    %c0_12 = arith.constant 0 : index
    %17 = vector.load %arg6[%c0_11, %c0_12] : memref<50x128xbf16, #tpu.memory_space<vmem>>, vector<50x128xbf16>
    %cst_13 = arith.constant dense<0.000000e+00> : vector<8x128xf32>
    %18 = tpu.matmul %16, %17, %cst_13 {dimension_numbers = #tpu.dot_dimension_numbers<[1], [0], [0], [1], [0, 0, 1, 1], [], []>} : vector<8x50xbf16>, vector<50x128xbf16>, vector<8x128xf32> -> vector<8x128xf32>
    %c0_14 = arith.constant 0 : index
    %c0_15 = arith.constant 0 : index
    %19 = vector.load %arg7[%c0_14, %c0_15] : memref<1x128xf32, #tpu.memory_space<vmem>>, vector<1x128xf32>
    %20 = vector.broadcast %19 : vector<1x128xf32> to vector<8x128xf32>
    %21 = arith.addf %18, %20 : vector<8x128xf32>
    %c0_16 = arith.constant 0 : index
    %c0_17 = arith.constant 0 : index
    %22 = vector.load %arg8[%c0_16, %c0_17] : memref<8x128xf32, #tpu.memory_space<vmem>>, vector<8x128xf32>
    tpu.vector_store %arg8[%c0_16, %c0_17], %21 {strides = array<i32>} : memref<8x128xf32, #tpu.memory_space<vmem>>, vector<8x128xf32>,
    return
  }
  func.func @transform_0(%arg0: i32) -> (i32, i32) {
    %c0_i32 = arith.constant 0 : i32
    %c0_i32_0 = arith.constant 0 : i32
    return %arg0, %c0_i32 : i32, i32
  }
  func.func @transform_1(%arg0: i32) -> (i32, i32) {
    %c0_i32 = arith.constant 0 : i32
    %c0_i32_0 = arith.constant 0 : i32
    %c0_i32_1 = arith.constant 0 : i32
    return %c0_i32, %c0_i32_0 : i32, i32
  }
  func.func @transform_2(%arg0: i32) -> (i32, i32) {
    %c0_i32 = arith.constant 0 : i32
    %c0_i32_0 = arith.constant 0 : i32
    %c0_i32_1 = arith.constant 0 : i32
    return %c0_i32, %c0_i32_0 : i32, i32
  }
  func.func @transform_3(%arg0: i32) -> (i32, i32) {
    %c0_i32 = arith.constant 0 : i32
    %c0_i32_0 = arith.constant 0 : i32
    %c0_i32_1 = arith.constant 0 : i32
    return %c0_i32, %c0_i32_0 : i32, i32
  }
  func.func @transform_4(%arg0: i32) -> (i32, i32) {
    %c0_i32 = arith.constant 0 : i32
    %c0_i32_0 = arith.constant 0 : i32
    %c0_i32_1 = arith.constant 0 : i32
    return %c0_i32, %c0_i32_0 : i32, i32
  }
  func.func @transform_5(%arg0: i32) -> (i32, i32) {
    %c0_i32 = arith.constant 0 : i32
    %c0_i32_0 = arith.constant 0 : i32
    %c0_i32_1 = arith.constant 0 : i32
    return %c0_i32, %c0_i32_0 : i32, i32
  }
  func.func @transform_6(%arg0: i32) -> (i32, i32) {
    %c0_i32 = arith.constant 0 : i32
    %c0_i32_0 = arith.constant 0 : i32
    %c0_i32_1 = arith.constant 0 : i32
    return %c0_i32, %c0_i32_0 : i32, i32
  }
  func.func @transform_7(%arg0: i32) -> (i32, i32) {
    %c0_i32 = arith.constant 0 : i32
    %c0_i32_0 = arith.constant 0 : i32
    return %arg0, %c0_i32 : i32, i32
  }
}

</mosaic_0001>

<bundles_post_ra>
// kernel: tpu_custom_call.1
= control target key start
LH: loop header
LB: loop body
LE: loop exit
PB: predicated region body
PF: predicated region fallthrough
CT: control target
= control target key end

     0   :  { %s3895_s0 = inlined_call_operand.vmem [shape: f32[8,2048], index: 0, kind: input, shape index: {}]   ;;  %s3896_s1 = inlined_call_operand.vmem [shape: bf16[2048,200], index: 1, kind: input, shape index: {}]   ;;  %s3897_s2 = inlined_call_operand.vmem [shape: f32[1,200], index: 2, kind: input, shape index: {}]   ;;  %s3898_s3 = inlined_call_operand.vmem [shape: bf16[200,50], index: 3, kind: input, shape index: {}]   ;;  %s3899_s4 = inlined_call_operand.vmem [shape: f32[1,50], index: 4, kind: input, shape index: {}]   ;;  %s3900_s5 = inlined_call_operand.vmem [shape: bf16[50,128], index: 5, kind: input, shape index: {}]   ;;  %s3901_s6 = inlined_call_operand.vmem [shape: f32[1,128], index: 6, kind: input, shape index: {}]   ;;  %s3902_s7 = inlined_call_operand.hbm [shape: f32[8,128], index: 7, kind: output, shape index: {}]  }
   0x1   :  { %v2521_v0 = vld [vmem:[%s3896_s1 + $0x4] ss:$8 sps:$4 sm:$0xff]   ;;  %v2525_v2 = vld [vmem:[%s3896_s1] ss:$8 sps:$4 sm:$0xff]   ;;  %v2527_v4 = vld [vmem:[%s3896_s1 + $0x14] ss:$8 sps:$4 sm:$0xff]  }
   0x2   :  { %v2523_v1 = vld [vmem:[%s3896_s1 + $0x304] ss:$8 sps:$4 sm:$0xff]   ;;  %1608 = vmatprep.subr.bf16.mxu1 %v2521_v0  ;;  %v2526_v3 = vld [vmem:[%s3896_s1 + $0x300] ss:$8 sps:$4 sm:$0xff]   ;;  %v2529_v5 = vld [vmem:[%s3896_s1 + $0x314] ss:$8 sps:$4 sm:$0xff]  }
   0x3   :  { %1731 = vmatprep.subr.bf16.mxu0 %v2523_v1  ;;  %1609 = vmatpush1.bf16.msra.mxu1 %v2525_v2  ;;  %v2531_v6 = vld [vmem:[%s3896_s1 + $0x10] ss:$8 sps:$4 sm:$0xff]   ;;  %v2533_v8 = vld [vmem:[%s3896_s1 + $0x24] ss:$8 sps:$4 sm:$0xff]   ;;  %v2537_v10 = vld [vmem:[%s3896_s1 + $0x20] ss:$8 sps:$4 sm:$0xff]  }
   0x4   :  { %1732 = vmatpush1.bf16.msra.mxu0 %v2526_v3  ;;  %1610 = vmatprep.subr.bf16.mxu1 %v2527_v4  ;;  %v2532_v7 = vld [vmem:[%s3896_s1 + $0x310] ss:$8 sps:$4 sm:$0xff]   ;;  %v2535_v9 = vld [vmem:[%s3896_s1 + $0x324] ss:$8 sps:$4 sm:$0xff]   ;;  %v2538_v11 = vld [vmem:[%s3896_s1 + $0x320] ss:$8 sps:$4 sm:$0xff]  }
   0x5   :  { %1733 = vmatprep.subr.bf16.mxu0 %v2529_v5  ;;  %v2539_v12 = vld [vmem:[%s3896_s1 + $0x34] ss:$8 sps:$4 sm:$0xff]   ;;  %v2543_v14 = vld [vmem:[%s3896_s1 + $0x30] ss:$8 sps:$4 sm:$0xff]   ;;  %v2545_v16 = vld [vmem:[%s3896_s1 + $0x44] ss:$8 sps:$4 sm:$0xff]  }
   0x6   :  { %v2541_v13 = vld [vmem:[%s3896_s1 + $0x334] ss:$8 sps:$4 sm:$0xff]   ;;  %v2544_v15 = vld [vmem:[%s3896_s1 + $0x330] ss:$8 sps:$4 sm:$0xff]   ;;  %v2547_v17 = vld [vmem:[%s3896_s1 + $0x344] ss:$8 sps:$4 sm:$0xff]  }
   0x7   :  { %1611 = vmatpush1.bf16.msra.mxu1 %v2531_v6  ;;  %v2549_v18 = vld [vmem:[%s3896_s1 + $0x40] ss:$8 sps:$4 sm:$0xff]   ;;  %v2551_v20 = vld [vmem:[%s3896_s1 + $0x54] ss:$8 sps:$4 sm:$0xff]   ;;  %v2555_v22 = vld [vmem:[%s3896_s1 + $0x50] ss:$8 sps:$4 sm:$0xff]  }
   0x8   :  { %1734 = vmatpush1.bf16.msra.mxu0 %v2532_v7  ;;  %1612 = vmatprep.subr.bf16.mxu1 %v2533_v8  ;;  %v2550_v19 = vld [vmem:[%s3896_s1 + $0x340] ss:$8 sps:$4 sm:$0xff]   ;;  %v2553_v21 = vld [vmem:[%s3896_s1 + $0x354] ss:$8 sps:$4 sm:$0xff]   ;;  %v2556_v23 = vld [vmem:[%s3896_s1 + $0x350] ss:$8 sps:$4 sm:$0xff]  }
   0x9   :  { %1735 = vmatprep.subr.bf16.mxu0 %v2535_v9  ;;  %v2557_v24 = vld [vmem:[%s3896_s1 + $0x64] ss:$8 sps:$4 sm:$0xff]   ;;  %v2561_v26 = vld [vmem:[%s3896_s1 + $0x60] ss:$8 sps:$4 sm:$0xff]   ;;  %v2563_v28 = vld [vmem:[%s3896_s1 + $0x74] ss:$8 sps:$4 sm:$0xff]  }
   0xa   :  { %v2559_v25 = vld [vmem:[%s3896_s1 + $0x364] ss:$8 sps:$4 sm:$0xff]   ;;  %v2562_v27 = vld [vmem:[%s3896_s1 + $0x360] ss:$8 sps:$4 sm:$0xff]   ;;  %v2565_v29 = vld [vmem:[%s3896_s1 + $0x374] ss:$8 sps:$4 sm:$0xff]  }
   0xb   :  { %1613 = vmatpush1.bf16.msra.mxu1 %v2537_v10  ;;  %v2567_v30 = vld [vmem:[%s3896_s1 + $0x70] ss:$8 sps:$4 sm:$0xff]   ;;  %v2569_v32 = vld [vmem:[%s3896_s1 + $0x84] ss:$8 sps:$4 sm:$0xff]   ;;  %v2573_v34 = vld [vmem:[%s3896_s1 + $0x80] ss:$8 sps:$4 sm:$0xff]  }
   0xc   :  { %1736 = vmatpush1.bf16.msra.mxu0 %v2538_v11  ;;  %1614 = vmatprep.subr.bf16.mxu1 %v2539_v12  ;;  %v2568_v31 = vld [vmem:[%s3896_s1 + $0x370] ss:$8 sps:$4 sm:$0xff]   ;;  %v2571_v33 = vld [vmem:[%s3896_s1 + $0x384] ss:$8 sps:$4 sm:$0xff]   ;;  %v2574_v35 = vld [vmem:[%s3896_s1 + $0x380] ss:$8 sps:$4 sm:$0xff]  }
   0xd   :  { %1737 = vmatprep.subr.bf16.mxu0 %v2541_v13  ;;  %v2575_v36 = vld [vmem:[%s3896_s1 + $0x94] ss:$8 sps:$4 sm:$0xff]   ;;  %v2579_v38 = vld [vmem:[%s3896_s1 + $0x90] ss:$8 sps:$4 sm:$0xff]   ;;  %v2581_v40 = vld [vmem:[%s3896_s1 + $0xa4] ss:$8 sps:$4 sm:$0xff]  }
   0xe   :  { %v2577_v37 = vld [vmem:[%s3896_s1 + $0x394] ss:$8 sps:$4 sm:$0xff]   ;;  %v2580_v39 = vld [vmem:[%s3896_s1 + $0x390] ss:$8 sps:$4 sm:$0xff]   ;;  %v2583_v41 = vld [vmem:[%s3896_s1 + $0x3a4] ss:$8 sps:$4 sm:$0xff]  }
   0xf   :  { %1615 = vmatpush1.bf16.msra.mxu1 %v2543_v14  ;;  %v2585_v42 = vld [vmem:[%s3896_s1 + $0xa0] ss:$8 sps:$4 sm:$0xff]   ;;  %v2587_v44 = vld [vmem:[%s3896_s1 + $0xb4] ss:$8 sps:$4 sm:$0xff]   ;;  %v2591_v47 = vld [vmem:[%s3896_s1 + $0xb0] ss:$8 sps:$4 sm:$0xff]  }
  0x10   :  { %1738 = vmatpush1.bf16.msra.mxu0 %v2544_v15  ;;  %1616 = vmatprep.subr.bf16.mxu1 %v2545_v16  ;;  %v2586_v43 = vld [vmem:[%s3896_s1 + $0x3a0] ss:$8 sps:$4 sm:$0xff]   ;;  %v2589_v45 = vld [vmem:[%s3896_s1 + $0x3b4] ss:$8 sps:$4 sm:$0xff]   ;;  %v2592_v49 = vld [vmem:[%s3896_s1 + $0x3b0] ss:$8 sps:$4 sm:$0xff]  }
  0x11   :  { %1739 = vmatprep.subr.bf16.mxu0 %v2547_v17  ;;  %v29_v46 = vld [vmem:[%s3895_s0 + $0x8] sm:$0xff]  ;;  %v35_v50 = vld [vmem:[%s3895_s0 + $0x38] sm:$0xff]  ;;  %v28_v5 = vld [vmem:[%s3895_s0] sm:$0xff] }
  0x12   :  { %v45_v48 = vpack.c.bf16 %v29_v46, %v29_v46  ;;  %v2593_v51 = vld [vmem:[%s3896_s1 + $0xc4] ss:$8 sps:$4 sm:$0xff]   ;;  %v51_v53 = vpack.c.bf16 %v35_v50, %v35_v50  ;;  %v2597_v54 = vld [vmem:[%s3896_s1 + $0xc0] ss:$8 sps:$4 sm:$0xff]   ;;  %v2599_v56 = vld [vmem:[%s3896_s1 + $0xd4] ss:$8 sps:$4 sm:$0xff]   ;;  %v44_v10 = vpack.c.bf16 %v28_v5, %v28_v5 }
  0x13   :  { %1617 = vmatpush1.bf16.msra.mxu1 %v2549_v18  ;;  %v2595_v52 = vld [vmem:[%s3896_s1 + $0x3c4] ss:$8 sps:$4 sm:$0xff]   ;;  %v2598_v55 = vld [vmem:[%s3896_s1 + $0x3c0] ss:$8 sps:$4 sm:$0xff]   ;;  %v2601_v57 = vld [vmem:[%s3896_s1 + $0x3d4] ss:$8 sps:$4 sm:$0xff]  }
  0x14   :  { %1740 = vmatpush1.bf16.msra.mxu0 %v2550_v19  ;;  %1618 = vmatprep.subr.bf16.mxu1 %v2551_v20  ;;  %v2603_v58 = vld [vmem:[%s3896_s1 + $0xd0] ss:$8 sps:$4 sm:$0xff]   ;;  %v2605_v60 = vld [vmem:[%s3896_s1 + $0xe4] ss:$8 sps:$4 sm:$0xff]   ;;  %v2609_v62 = vld [vmem:[%s3896_s1 + $0xe0] ss:$8 sps:$4 sm:$0xff]  }
  0x15   :  { %1741 = vmatprep.subr.bf16.mxu0 %v2553_v21  ;;  %1640 = vmatprep.mubr.bf16.mxu1 %v45_v48  ;;  %v2604_v59 = vld [vmem:[%s3896_s1 + $0x3d0] ss:$8 sps:$4 sm:$0xff]   ;;  %v2607_v61 = vld [vmem:[%s3896_s1 + $0x3e4] ss:$8 sps:$4 sm:$0xff]   ;;  %v2610_v63 = vld [vmem:[%s3896_s1 + $0x3e0] ss:$8 sps:$4 sm:$0xff]  }
  0x16   :  { %1763 = vmatprep.mubr.bf16.mxu0 %v51_v53  ;;  %v2611_v0 = vld [vmem:[%s3896_s1 + $0xf4] ss:$8 sps:$4 sm:$0xff]   ;;  %v2615_v2 = vld [vmem:[%s3896_s1 + $0xf0] ss:$8 sps:$4 sm:$0xff]   ;;  %v2619_v4 = vld [vmem:[%s3896_s1 + $0x104] ss:$8 sps:$4 sm:$0xff]  }
  0x17   :  { %1619 = vmatpush1.bf16.msra.mxu1 %v2555_v22  ;;  %v2613_v1 = vld [vmem:[%s3896_s1 + $0x3f4] ss:$8 sps:$4 sm:$0xff]   ;;  %v2616_v3 = vld [vmem:[%s3896_s1 + $0x3f0] ss:$8 sps:$4 sm:$0xff]   ;;  %v2622_v7 = vld [vmem:[%s3896_s1 + $0x404] ss:$8 sps:$4 sm:$0xff]  }
  0x18   :  { %1742 = vmatpush1.bf16.msra.mxu0 %v2556_v23  ;;  %1620 = vmatprep.subr.bf16.mxu1 %v2557_v24  ;;  %v34_v6 = vld [vmem:[%s3895_s0 + $0x30] sm:$0xff]  ;;  %v2617_v8 = vld [vmem:[%s3896_s1 + $0x100] ss:$8 sps:$4 sm:$0xff]   ;;  %v2631_v16 = vld [vmem:[%s3896_s1 + $0x124] ss:$8 sps:$4 sm:$0xff]  }
  0x19   :  { %1743 = vmatprep.subr.bf16.mxu0 %v2559_v25  ;;  %v2620_v9 = vld [vmem:[%s3896_s1 + $0x400] ss:$8 sps:$4 sm:$0xff]   ;;  %v50_v11 = vpack.c.bf16 %v34_v6, %v34_v6  ;;  %v2625_v12 = vld [vmem:[%s3896_s1 + $0x114] ss:$8 sps:$4 sm:$0xff]   ;;  %v2623_v14 = vld [vmem:[%s3896_s1 + $0x110] ss:$8 sps:$4 sm:$0xff]  }
  0x1a   :  { %v2628_v13 = vld [vmem:[%s3896_s1 + $0x414] ss:$8 sps:$4 sm:$0xff]   ;;  %v2626_v15 = vld [vmem:[%s3896_s1 + $0x410] ss:$8 sps:$4 sm:$0xff]   ;;  %v2634_v17 = vld [vmem:[%s3896_s1 + $0x424] ss:$8 sps:$4 sm:$0xff]  }
  0x1b   :  { %1621 = vmatpush1.bf16.msra.mxu1 %v2561_v26  ;;  %v2629_v18 = vld [vmem:[%s3896_s1 + $0x120] ss:$8 sps:$4 sm:$0xff]   ;;  %v2637_v20 = vld [vmem:[%s3896_s1 + $0x134] ss:$8 sps:$4 sm:$0xff]   ;;  %v2635_v22 = vld [vmem:[%s3896_s1 + $0x130] ss:$8 sps:$4 sm:$0xff]  }
  0x1c   :  { %1744 = vmatpush1.bf16.msra.mxu0 %v2562_v27  ;;  %1622 = vmatprep.subr.bf16.mxu1 %v2563_v28  ;;  %v2632_v19 = vld [vmem:[%s3896_s1 + $0x420] ss:$8 sps:$4 sm:$0xff]   ;;  %v2640_v21 = vld [vmem:[%s3896_s1 + $0x434] ss:$8 sps:$4 sm:$0xff]   ;;  %v2638_v23 = vld [vmem:[%s3896_s1 + $0x430] ss:$8 sps:$4 sm:$0xff]  }
  0x1d   :  { %1745 = vmatprep.subr.bf16.mxu0 %v2565_v29  ;;  %v2643_v24 = vld [vmem:[%s3896_s1 + $0x144] ss:$8 sps:$4 sm:$0xff]   ;;  %v2641_v26 = vld [vmem:[%s3896_s1 + $0x140] ss:$8 sps:$4 sm:$0xff]   ;;  %v2649_v28 = vld [vmem:[%s3896_s1 + $0x154] ss:$8 sps:$4 sm:$0xff]  }
  0x1e   :  { %v2646_v25 = vld [vmem:[%s3896_s1 + $0x444] ss:$8 sps:$4 sm:$0xff]   ;;  %v2644_v27 = vld [vmem:[%s3896_s1 + $0x440] ss:$8 sps:$4 sm:$0xff]   ;;  %v2652_v29 = vld [vmem:[%s3896_s1 + $0x454] ss:$8 sps:$4 sm:$0xff]  }
  0x1f   :  { %1623 = vmatpush1.bf16.msra.mxu1 %v2567_v30  ;;  %v2647_v30 = vld [vmem:[%s3896_s1 + $0x150] ss:$8 sps:$4 sm:$0xff]   ;;  %v2665_v46 = vld [vmem:[%s3896_s1 + $0x180] ss:$8 sps:$4 sm:$0xff]   ;;  %v2673_v48 = vld [vmem:[%s3896_s1 + $0x194] ss:$8 sps:$4 sm:$0xff]  }
  0x20   :  { %1746 = vmatpush1.bf16.msra.mxu0 %v2568_v31  ;;  %1624 = vmatprep.subr.bf16.mxu1 %v2569_v32  ;;  %v2650_v31 = vld [vmem:[%s3896_s1 + $0x450] ss:$8 sps:$4 sm:$0xff]   ;;  %v2655_v32 = vld [vmem:[%s3896_s1 + $0x164] ss:$8 sps:$4 sm:$0xff]   ;;  %v2701_v6 = vld [vmem:[%s3896_s1 + $0x1e0] ss:$8 sps:$4 sm:$0xff]  }
  0x21   :  { %1747 = vmatprep.subr.bf16.mxu0 %v2571_v33  ;;  %v2658_v33 = vld [vmem:[%s3896_s1 + $0x464] ss:$8 sps:$4 sm:$0xff]   ;;  %v2671_v50 = vld [vmem:[%s3896_s1 + $0x190] ss:$8 sps:$4 sm:$0xff]  }
  0x22   :  { %v2682_v53 = vld [vmem:[%s3896_s1 + $0x4a4] ss:$8 sps:$4 sm:$0xff]  }
  0x23   :  { %1625 = vmatpush1.bf16.msra.mxu1 %v2573_v34  ;;  %v31_v34 = vld [vmem:[%s3895_s0 + $0x18] sm:$0xff]  ;;  %v2706_v5 = vld [vmem:[%s3896_s1 + $0x4e4] ss:$8 sps:$4 sm:$0xff]  }
  0x24   :  { %1748 = vmatpush1.bf16.msra.mxu0 %v2574_v35  ;;  %1626 = vmatprep.subr.bf16.mxu1 %v2575_v36  ;;  %v2653_v35 = vld [vmem:[%s3896_s1 + $0x160] ss:$8 sps:$4 sm:$0xff]   ;;  %v47_v36 = vpack.c.bf16 %v31_v34, %v31_v34  ;;  %v2731_v34 = vld [vmem:[%s3896_s1 + $0x230] ss:$8 sps:$4 sm:$0xff]  }
  0x25   :  { %1749 = vmatprep.subr.bf16.mxu0 %v2577_v37  ;;  %v2656_v37 = vld [vmem:[%s3896_s1 + $0x460] ss:$8 sps:$4 sm:$0xff]  }
  0x27   :  { %1627 = vmatpush1.bf16.msra.mxu1 %v2579_v38  ;;  %v37_v38 = vld [vmem:[%s3895_s0 + $0x48] sm:$0xff] }
  0x28   :  { %1750 = vmatpush1.bf16.msra.mxu0 %v2580_v39  ;;  %1628 = vmatprep.subr.bf16.mxu1 %v2581_v40  ;;  %v2661_v39 = vld [vmem:[%s3896_s1 + $0x174] ss:$8 sps:$4 sm:$0xff]  }
  0x29   :  { %1751 = vmatprep.subr.bf16.mxu0 %v2583_v41  ;;  %v2664_v40 = vld [vmem:[%s3896_s1 + $0x474] ss:$8 sps:$4 sm:$0xff]   ;;  %v53_v41 = vpack.c.bf16 %v37_v38, %v37_v38  ;;  %v2737_v38 = vld [vmem:[%s3896_s1 + $0x240] ss:$8 sps:$4 sm:$0xff]  }
  0x2b   :  { %1629 = vmatpush1.bf16.msra.mxu1 %v2585_v42  ;;  %v2659_v42 = vld [vmem:[%s3896_s1 + $0x170] ss:$8 sps:$4 sm:$0xff]  }
  0x2c   :  { %1752 = vmatpush1.bf16.msra.mxu0 %v2586_v43  ;;  %1630 = vmatprep.subr.bf16.mxu1 %v2587_v44  ;;  %v2662_v43 = vld [vmem:[%s3896_s1 + $0x470] ss:$8 sps:$4 sm:$0xff]   ;;  %v2667_v44 = vld [vmem:[%s3896_s1 + $0x184] ss:$8 sps:$4 sm:$0xff]  }
  0x2d   :  { %1753 = vmatprep.subr.bf16.mxu0 %v2589_v45  ;;  %v2670_v45 = vld [vmem:[%s3896_s1 + $0x484] ss:$8 sps:$4 sm:$0xff]  }
  0x2f   :  { %1631 = vmatpush1.bf16.msra.mxu1 %v2591_v47  ;;  %v2668_v47 = vld [vmem:[%s3896_s1 + $0x480] ss:$8 sps:$4 sm:$0xff]  }
  0x30   :  { %1754 = vmatpush1.bf16.msra.mxu0 %v2592_v49  ;;  %1632 = vmatprep.subr.bf16.mxu1 %v2593_v51  ;;  %v2676_v49 = vld [vmem:[%s3896_s1 + $0x494] ss:$8 sps:$4 sm:$0xff]   ;;  %v2674_v51 = vld [vmem:[%s3896_s1 + $0x490] ss:$8 sps:$4 sm:$0xff]  }
  0x31   :  { %1755 = vmatprep.subr.bf16.mxu0 %v2595_v52  ;;  %v2679_v52 = vld [vmem:[%s3896_s1 + $0x1a4] ss:$8 sps:$4 sm:$0xff]  }
  0x33   :  { %1633 = vmatpush1.bf16.msra.mxu1 %v2597_v54  ;;  %v2677_v54 = vld [vmem:[%s3896_s1 + $0x1a0] ss:$8 sps:$4 sm:$0xff]  }
  0x34   :  { %1756 = vmatpush1.bf16.msra.mxu0 %v2598_v55  ;;  %1634 = vmatprep.subr.bf16.mxu1 %v2599_v56  ;;  %v2680_v55 = vld [vmem:[%s3896_s1 + $0x4a0] ss:$8 sps:$4 sm:$0xff]   ;;  %v2685_v56 = vld [vmem:[%s3896_s1 + $0x1b4] ss:$8 sps:$4 sm:$0xff]  }
  0x35   :  { %1757 = vmatprep.subr.bf16.mxu0 %v2601_v57  ;;  %v2688_v57 = vld [vmem:[%s3896_s1 + $0x4b4] ss:$8 sps:$4 sm:$0xff]  }
  0x37   :  { %1635 = vmatpush1.bf16.msra.mxu1 %v2603_v58  ;;  %v2683_v58 = vld [vmem:[%s3896_s1 + $0x1b0] ss:$8 sps:$4 sm:$0xff]  }
  0x38   :  { %1758 = vmatpush1.bf16.msra.mxu0 %v2604_v59  ;;  %1636 = vmatprep.subr.bf16.mxu1 %v2605_v60  ;;  %v2686_v59 = vld [vmem:[%s3896_s1 + $0x4b0] ss:$8 sps:$4 sm:$0xff]   ;;  %v2691_v60 = vld [vmem:[%s3896_s1 + $0x1c4] ss:$8 sps:$4 sm:$0xff]  }
  0x39   :  { %1759 = vmatprep.subr.bf16.mxu0 %v2607_v61  ;;  %v2694_v61 = vld [vmem:[%s3896_s1 + $0x4c4] ss:$8 sps:$4 sm:$0xff]  }
  0x3b   :  { %1637 = vmatpush1.bf16.msra.mxu1 %v2609_v62  ;;  %v2689_v62 = vld [vmem:[%s3896_s1 + $0x1c0] ss:$8 sps:$4 sm:$0xff]  }
  0x3c   :  { %1760 = vmatpush1.bf16.msra.mxu0 %v2610_v63  ;;  %1638 = vmatprep.subr.bf16.mxu1 %v2611_v0  ;;  %v2692_v63 = vld [vmem:[%s3896_s1 + $0x4c0] ss:$8 sps:$4 sm:$0xff]   ;;  %v2697_v0 = vld [vmem:[%s3896_s1 + $0x1d4] ss:$8 sps:$4 sm:$0xff]  }
  0x3d   :  { %1761 = vmatprep.subr.bf16.mxu0 %v2613_v1  ;;  %v2700_v1 = vld [vmem:[%s3896_s1 + $0x4d4] ss:$8 sps:$4 sm:$0xff]  }
  0x3f   :  { %1639 = vmatpush1.bf16.msra.mxu1 %v2615_v2  ;;  %v2695_v2 = vld [vmem:[%s3896_s1 + $0x1d0] ss:$8 sps:$4 sm:$0xff]  }
  0x40   :  { %1762 = vmatpush1.bf16.msra.mxu0 %v2616_v3  ;;  %1649 = vmatprep.subr.bf16.mxu1 %v2619_v4  ;;  %v2698_v3 = vld [vmem:[%s3896_s1 + $0x4d0] ss:$8 sps:$4 sm:$0xff]   ;;  %v2703_v4 = vld [vmem:[%s3896_s1 + $0x1e4] ss:$8 sps:$4 sm:$0xff]  }
  0x41   :  { %1772 = vmatprep.subr.bf16.mxu0 %v2622_v7  ;;  %v2704_v7 = vld [vmem:[%s3896_s1 + $0x4e0] ss:$8 sps:$4 sm:$0xff]  }
  0x42   :  { %1641 = vmatmul.mubr.bf16.vlgmr.msra.gmra.mrb[0].mxu1 %v44_v10  ;;  %v2707_v10 = vld [vmem:[%s3896_s1 + $0x1f0] ss:$8 sps:$4 sm:$0xff]  }
  0x43   :  { %1764 = vmatmul.mubr.bf16.vlgmr.msra.gmra.mrb[0].mxu0 %v50_v11  ;;  %1650 = vmatpush1.bf16.msra.mxu1 %v2617_v8  ;;  %v2709_v8 = vld [vmem:[%s3896_s1 + $0x1f4] ss:$8 sps:$4 sm:$0xff]   ;;  %v2710_v11 = vld [vmem:[%s3896_s1 + $0x4f0] ss:$8 sps:$4 sm:$0xff]  }
  0x44   :  { %1773 = vmatpush1.bf16.msra.mxu0 %v2620_v9  ;;  %1651 = vmatprep.subr.bf16.mxu1 %v2625_v12  ;;  %v2712_v9 = vld [vmem:[%s3896_s1 + $0x4f4] ss:$8 sps:$4 sm:$0xff]   ;;  %v2715_v12 = vld [vmem:[%s3896_s1 + $0x204] ss:$8 sps:$4 sm:$0xff]  }
  0x45   :  { %1774 = vmatprep.subr.bf16.mxu0 %v2628_v13  ;;  %1681 = vmatprep.mubr.bf16.mxu1 %v47_v36  ;;  %v30_v13 = vld [vmem:[%s3895_s0 + $0x10] sm:$0xff]  ;;  %v2739_v36 = vld [vmem:[%s3896_s1 + $0x244] ss:$8 sps:$4 sm:$0xff]  }
  0x46   :  { %1804 = vmatprep.mubr.bf16.mxu0 %v53_v41  ;;  %v2748_v41 = vld [vmem:[%s3896_s1 + $0x554] ss:$8 sps:$4 sm:$0xff]  }
  0x47   :  { %1652 = vmatpush1.bf16.msra.mxu1 %v2623_v14  ;;  %v36_v14 = vld [vmem:[%s3895_s0 + $0x40] sm:$0xff] }
  0x48   :  { %1775 = vmatpush1.bf16.msra.mxu0 %v2626_v15  ;;  %1653 = vmatprep.subr.bf16.mxu1 %v2631_v16  ;;  %v2718_v15 = vld [vmem:[%s3896_s1 + $0x504] ss:$8 sps:$4 sm:$0xff]   ;;  %v2713_v16 = vld [vmem:[%s3896_s1 + $0x200] ss:$8 sps:$4 sm:$0xff]  }
  0x49   :  { %1776 = vmatprep.subr.bf16.mxu0 %v2634_v17  ;;  %v2716_v17 = vld [vmem:[%s3896_s1 + $0x500] ss:$8 sps:$4 sm:$0xff]  }
  0x4b   :  { %1654 = vmatpush1.bf16.msra.mxu1 %v2629_v18  ;;  %v46_v18 = vpack.c.bf16 %v30_v13, %v30_v13  ;;  %v2802_v13 = vld [vmem:[%s3896_s1 + $0x5e4] ss:$8 sps:$4 sm:$0xff]  }
  0x4c   :  { %1777 = vmatpush1.bf16.msra.mxu0 %v2632_v19  ;;  %1655 = vmatprep.subr.bf16.mxu1 %v2637_v20  ;;  %v52_v19 = vpack.c.bf16 %v36_v14, %v36_v14  ;;  %v2721_v20 = vld [vmem:[%s3896_s1 + $0x214] ss:$8 sps:$4 sm:$0xff]   ;;  %v2797_v14 = vld [vmem:[%s3896_s1 + $0x2e0] ss:$8 sps:$4 sm:$0xff]  }
  0x4d   :  { %1778 = vmatprep.subr.bf16.mxu0 %v2640_v21  ;;  %v2724_v21 = vld [vmem:[%s3896_s1 + $0x514] ss:$8 sps:$4 sm:$0xff]  }
  0x4f   :  { %1656 = vmatpush1.bf16.msra.mxu1 %v2635_v22  ;;  %v33_v22 = vld [vmem:[%s3895_s0 + $0x28] sm:$0xff] }
  0x50   :  { %1779 = vmatpush1.bf16.msra.mxu0 %v2638_v23  ;;  %1657 = vmatprep.subr.bf16.mxu1 %v2643_v24  ;;  %v2719_v23 = vld [vmem:[%s3896_s1 + $0x210] ss:$8 sps:$4 sm:$0xff]   ;;  %v49_v24 = vpack.c.bf16 %v33_v22, %v33_v22 }
  0x51   :  { %1780 = vmatprep.subr.bf16.mxu0 %v2646_v25  ;;  %v39_v25 = vld [vmem:[%s3895_s0 + $0x58] sm:$0xff] }
  0x53   :  { %1658 = vmatpush1.bf16.msra.mxu1 %v2641_v26  ;;  %v2722_v26 = vld [vmem:[%s3896_s1 + $0x510] ss:$8 sps:$4 sm:$0xff]  }
  0x54   :  { %1781 = vmatpush1.bf16.msra.mxu0 %v2644_v27  ;;  %1659 = vmatprep.subr.bf16.mxu1 %v2649_v28  ;;  %v2727_v27 = vld [vmem:[%s3896_s1 + $0x224] ss:$8 sps:$4 sm:$0xff]   ;;  %v55_v28 = vpack.c.bf16 %v39_v25, %v39_v25 }
  0x55   :  { %1782 = vmatprep.subr.bf16.mxu0 %v2652_v29  ;;  %v2730_v29 = vld [vmem:[%s3896_s1 + $0x524] ss:$8 sps:$4 sm:$0xff]  }
  0x57   :  { %1660 = vmatpush1.bf16.msra.mxu1 %v2647_v30  ;;  %v2725_v30 = vld [vmem:[%s3896_s1 + $0x220] ss:$8 sps:$4 sm:$0xff]  }
  0x58   :  { %1783 = vmatpush1.bf16.msra.mxu0 %v2650_v31  ;;  %1661 = vmatprep.subr.bf16.mxu1 %v2655_v32  ;;  %v2728_v31 = vld [vmem:[%s3896_s1 + $0x520] ss:$8 sps:$4 sm:$0xff]   ;;  %v2733_v32 = vld [vmem:[%s3896_s1 + $0x234] ss:$8 sps:$4 sm:$0xff]  }
  0x59   :  { %1784 = vmatprep.subr.bf16.mxu0 %v2658_v33  ;;  %v2736_v33 = vld [vmem:[%s3896_s1 + $0x534] ss:$8 sps:$4 sm:$0xff]  }
  0x5b   :  { %1662 = vmatpush1.bf16.msra.mxu1 %v2653_v35  ;;  %v2734_v35 = vld [vmem:[%s3896_s1 + $0x530] ss:$8 sps:$4 sm:$0xff]  }
  0x5c   :  { %1785 = vmatpush1.bf16.msra.mxu0 %v2656_v37  ;;  %1663 = vmatprep.subr.bf16.mxu1 %v2661_v39  ;;  %v2742_v37 = vld [vmem:[%s3896_s1 + $0x544] ss:$8 sps:$4 sm:$0xff]   ;;  %v2740_v39 = vld [vmem:[%s3896_s1 + $0x540] ss:$8 sps:$4 sm:$0xff]  }
  0x5d   :  { %1786 = vmatprep.subr.bf16.mxu0 %v2664_v40  ;;  %v2745_v40 = vld [vmem:[%s3896_s1 + $0x254] ss:$8 sps:$4 sm:$0xff]  }
  0x5f   :  { %1664 = vmatpush1.bf16.msra.mxu1 %v2659_v42  ;;  %v2743_v42 = vld [vmem:[%s3896_s1 + $0x250] ss:$8 sps:$4 sm:$0xff]  }
  0x60   :  { %1787 = vmatpush1.bf16.msra.mxu0 %v2662_v43  ;;  %1665 = vmatprep.subr.bf16.mxu1 %v2667_v44  ;;  %v2746_v43 = vld [vmem:[%s3896_s1 + $0x550] ss:$8 sps:$4 sm:$0xff]   ;;  %v2751_v44 = vld [vmem:[%s3896_s1 + $0x264] ss:$8 sps:$4 sm:$0xff]  }
  0x61   :  { %1788 = vmatprep.subr.bf16.mxu0 %v2670_v45  ;;  %v2754_v45 = vld [vmem:[%s3896_s1 + $0x564] ss:$8 sps:$4 sm:$0xff]  }
  0x63   :  { %1666 = vmatpush1.bf16.msra.mxu1 %v2665_v46  ;;  %v2749_v46 = vld [vmem:[%s3896_s1 + $0x260] ss:$8 sps:$4 sm:$0xff]  }
  0x64   :  { %1789 = vmatpush1.bf16.msra.mxu0 %v2668_v47  ;;  %1667 = vmatprep.subr.bf16.mxu1 %v2673_v48  ;;  %v2752_v47 = vld [vmem:[%s3896_s1 + $0x560] ss:$8 sps:$4 sm:$0xff]   ;;  %v2757_v48 = vld [vmem:[%s3896_s1 + $0x274] ss:$8 sps:$4 sm:$0xff]  }
  0x65   :  { %1790 = vmatprep.subr.bf16.mxu0 %v2676_v49  ;;  %v2760_v49 = vld [vmem:[%s3896_s1 + $0x574] ss:$8 sps:$4 sm:$0xff]  }
  0x67   :  { %1668 = vmatpush1.bf16.msra.mxu1 %v2671_v50  ;;  %v2755_v50 = vld [vmem:[%s3896_s1 + $0x270] ss:$8 sps:$4 sm:$0xff]  }
  0x68   :  { %1791 = vmatpush1.bf16.msra.mxu0 %v2674_v51  ;;  %1669 = vmatprep.subr.bf16.mxu1 %v2679_v52  ;;  %v2758_v51 = vld [vmem:[%s3896_s1 + $0x570] ss:$8 sps:$4 sm:$0xff]   ;;  %v2763_v52 = vld [vmem:[%s3896_s1 + $0x284] ss:$8 sps:$4 sm:$0xff]  }
  0x69   :  { %1792 = vmatprep.subr.bf16.mxu0 %v2682_v53  ;;  %v2766_v53 = vld [vmem:[%s3896_s1 + $0x584] ss:$8 sps:$4 sm:$0xff]  }
  0x6b   :  { %1670 = vmatpush1.bf16.msra.mxu1 %v2677_v54  ;;  %v2761_v54 = vld [vmem:[%s3896_s1 + $0x280] ss:$8 sps:$4 sm:$0xff]  }
  0x6c   :  { %1793 = vmatpush1.bf16.msra.mxu0 %v2680_v55  ;;  %1671 = vmatprep.subr.bf16.mxu1 %v2685_v56  ;;  %v2764_v55 = vld [vmem:[%s3896_s1 + $0x580] ss:$8 sps:$4 sm:$0xff]   ;;  %v2769_v56 = vld [vmem:[%s3896_s1 + $0x294] ss:$8 sps:$4 sm:$0xff]  }
  0x6d   :  { %1794 = vmatprep.subr.bf16.mxu0 %v2688_v57  ;;  %v2772_v57 = vld [vmem:[%s3896_s1 + $0x594] ss:$8 sps:$4 sm:$0xff]  }
  0x6f   :  { %1672 = vmatpush1.bf16.msra.mxu1 %v2683_v58  ;;  %v2767_v58 = vld [vmem:[%s3896_s1 + $0x290] ss:$8 sps:$4 sm:$0xff]  }
  0x70   :  { %1795 = vmatpush1.bf16.msra.mxu0 %v2686_v59  ;;  %1673 = vmatprep.subr.bf16.mxu1 %v2691_v60  ;;  %v2770_v59 = vld [vmem:[%s3896_s1 + $0x590] ss:$8 sps:$4 sm:$0xff]   ;;  %v2775_v60 = vld [vmem:[%s3896_s1 + $0x2a4] ss:$8 sps:$4 sm:$0xff]  }
  0x71   :  { %1796 = vmatprep.subr.bf16.mxu0 %v2694_v61  ;;  %v2778_v61 = vld [vmem:[%s3896_s1 + $0x5a4] ss:$8 sps:$4 sm:$0xff]  }
  0x73   :  { %1674 = vmatpush1.bf16.msra.mxu1 %v2689_v62  ;;  %v2773_v62 = vld [vmem:[%s3896_s1 + $0x2a0] ss:$8 sps:$4 sm:$0xff]  }
  0x74   :  { %1797 = vmatpush1.bf16.msra.mxu0 %v2692_v63  ;;  %1675 = vmatprep.subr.bf16.mxu1 %v2697_v0  ;;  %v2776_v63 = vld [vmem:[%s3896_s1 + $0x5a0] ss:$8 sps:$4 sm:$0xff]   ;;  %v2781_v0 = vld [vmem:[%s3896_s1 + $0x2b4] ss:$8 sps:$4 sm:$0xff]  }
  0x75   :  { %1798 = vmatprep.subr.bf16.mxu0 %v2700_v1  ;;  %v2784_v1 = vld [vmem:[%s3896_s1 + $0x5b4] ss:$8 sps:$4 sm:$0xff]  }
  0x77   :  { %1676 = vmatpush1.bf16.msra.mxu1 %v2695_v2  ;;  %v2779_v2 = vld [vmem:[%s3896_s1 + $0x2b0] ss:$8 sps:$4 sm:$0xff]  }
  0x78   :  { %1799 = vmatpush1.bf16.msra.mxu0 %v2698_v3  ;;  %1677 = vmatprep.subr.bf16.mxu1 %v2703_v4  ;;  %v2782_v3 = vld [vmem:[%s3896_s1 + $0x5b0] ss:$8 sps:$4 sm:$0xff]   ;;  %v2787_v4 = vld [vmem:[%s3896_s1 + $0x2c4] ss:$8 sps:$4 sm:$0xff]  }
  0x79   :  { %1800 = vmatprep.subr.bf16.mxu0 %v2706_v5  ;;  %v2790_v5 = vld [vmem:[%s3896_s1 + $0x5c4] ss:$8 sps:$4 sm:$0xff]  }
  0x7b   :  { %1678 = vmatpush1.bf16.msra.mxu1 %v2701_v6  ;;  %v2785_v6 = vld [vmem:[%s3896_s1 + $0x2c0] ss:$8 sps:$4 sm:$0xff]  }
  0x7c   :  { %1801 = vmatpush1.bf16.msra.mxu0 %v2704_v7  ;;  %1679 = vmatprep.subr.bf16.mxu1 %v2709_v8  ;;  %v2788_v7 = vld [vmem:[%s3896_s1 + $0x5c0] ss:$8 sps:$4 sm:$0xff]   ;;  %v2793_v8 = vld [vmem:[%s3896_s1 + $0x2d4] ss:$8 sps:$4 sm:$0xff]  }
  0x7d   :  { %1802 = vmatprep.subr.bf16.mxu0 %v2712_v9  ;;  %v2796_v9 = vld [vmem:[%s3896_s1 + $0x5d4] ss:$8 sps:$4 sm:$0xff]  }
  0x7f   :  { %1680 = vmatpush1.bf16.msra.mxu1 %v2707_v10  ;;  %v2791_v10 = vld [vmem:[%s3896_s1 + $0x2d0] ss:$8 sps:$4 sm:$0xff]  }
  0x80   :  { %1803 = vmatpush1.bf16.msra.mxu0 %v2710_v11  ;;  %1690 = vmatprep.subr.bf16.mxu1 %v2715_v12  ;;  %v2794_v11 = vld [vmem:[%s3896_s1 + $0x5d0] ss:$8 sps:$4 sm:$0xff]   ;;  %v2799_v12 = vld [vmem:[%s3896_s1 + $0x2e4] ss:$8 sps:$4 sm:$0xff]  }
  0x81   :  { %1813 = vmatprep.subr.bf16.mxu0 %v2718_v15  ;;  %v2800_v15 = vld [vmem:[%s3896_s1 + $0x5e0] ss:$8 sps:$4 sm:$0xff]  }
  0x82   :  { %1682 = vmatmul.mubr.bf16.vlgmr.msra.gmra.mrb[0].mxu1 %v46_v18 }
  0x83   :  { %1805 = vmatmul.mubr.bf16.vlgmr.msra.gmra.mrb[0].mxu0 %v52_v19  ;;  %1691 = vmatpush1.bf16.msra.mxu1 %v2713_v16  ;;  %v2805_v16 = vld [vmem:[%s3896_s1 + $0x2f4] ss:$8 sps:$4 sm:$0xff]  }
  0x84   :  { %1814 = vmatpush1.bf16.msra.mxu0 %v2716_v17  ;;  %1692 = vmatprep.subr.bf16.mxu1 %v2721_v20  ;;  %v2808_v17 = vld [vmem:[%s3896_s1 + $0x5f4] ss:$8 sps:$4 sm:$0xff]  }
  0x85   :  { %1815 = vmatprep.subr.bf16.mxu0 %v2724_v21  ;;  %1722 = vmatprep.mubr.bf16.mxu1 %v49_v24 }
  0x86   :  { %1845 = vmatprep.mubr.bf16.mxu0 %v55_v28 }
  0x87   :  { %1693 = vmatpush1.bf16.msra.mxu1 %v2719_v23 }
  0x88   :  { %1816 = vmatpush1.bf16.msra.mxu0 %v2722_v26  ;;  %1694 = vmatprep.subr.bf16.mxu1 %v2727_v27 }
  0x89   :  { %1817 = vmatprep.subr.bf16.mxu0 %v2730_v29 }
  0x8b   :  { %1695 = vmatpush1.bf16.msra.mxu1 %v2725_v30 }
  0x8c   :  { %1818 = vmatpush1.bf16.msra.mxu0 %v2728_v31  ;;  %1696 = vmatprep.subr.bf16.mxu1 %v2733_v32 }
  0x8d   :  { %1819 = vmatprep.subr.bf16.mxu0 %v2736_v33 }
  0x8f   :  { %1697 = vmatpush1.bf16.msra.mxu1 %v2731_v34 }
  0x90   :  { %1820 = vmatpush1.bf16.msra.mxu0 %v2734_v35  ;;  %1698 = vmatprep.subr.bf16.mxu1 %v2739_v36 }
  0x91   :  { %1821 = vmatprep.subr.bf16.mxu0 %v2742_v37 }
  0x93   :  { %1699 = vmatpush1.bf16.msra.mxu1 %v2737_v38 }
  0x94   :  { %1822 = vmatpush1.bf16.msra.mxu0 %v2740_v39  ;;  %1700 = vmatprep.subr.bf16.mxu1 %v2745_v40 }
  0x95   :  { %1823 = vmatprep.subr.bf16.mxu0 %v2748_v41 }
  0x97   :  { %1701 = vmatpush1.bf16.msra.mxu1 %v2743_v42 }
  0x98   :  { %1824 = vmatpush1.bf16.msra.mxu0 %v2746_v43  ;;  %1702 = vmatprep.subr.bf16.mxu1 %v2751_v44 }
  0x99   :  { %1825 = vmatprep.subr.bf16.mxu0 %v2754_v45 }
  0x9b   :  { %1703 = vmatpush1.bf16.msra.mxu1 %v2749_v46 }
  0x9c   :  { %1826 = vmatpush1.bf16.msra.mxu0 %v2752_v47  ;;  %1704 = vmatprep.subr.bf16.mxu1 %v2757_v48 }
  0x9d   :  { %1827 = vmatprep.subr.bf16.mxu0 %v2760_v49 }
  0x9f   :  { %1705 = vmatpush1.bf16.msra.mxu1 %v2755_v50 }
  0xa0   :  { %1828 = vmatpush1.bf16.msra.mxu0 %v2758_v51  ;;  %1706 = vmatprep.subr.bf16.mxu1 %v2763_v52 }
  0xa1   :  { %1829 = vmatprep.subr.bf16.mxu0 %v2766_v53 }
  0xa3   :  { %1707 = vmatpush1.bf16.msra.mxu1 %v2761_v54 }
  0xa4   :  { %1830 = vmatpush1.bf16.msra.mxu0 %v2764_v55  ;;  %1708 = vmatprep.subr.bf16.mxu1 %v2769_v56 }
  0xa5   :  { %1831 = vmatprep.subr.bf16.mxu0 %v2772_v57 }
  0xa7   :  { %1709 = vmatpush1.bf16.msra.mxu1 %v2767_v58 }
  0xa8   :  { %1832 = vmatpush1.bf16.msra.mxu0 %v2770_v59  ;;  %1710 = vmatprep.subr.bf16.mxu1 %v2775_v60 }
  0xa9   :  { %1833 = vmatprep.subr.bf16.mxu0 %v2778_v61 }
  0xab   :  { %1711 = vmatpush1.bf16.msra.mxu1 %v2773_v62 }
  0xac   :  { %1834 = vmatpush1.bf16.msra.mxu0 %v2776_v63  ;;  %1712 = vmatprep.subr.bf16.mxu1 %v2781_v0 }
  0xad   :  { %1835 = vmatprep.subr.bf16.mxu0 %v2784_v1 }
  0xaf   :  { %1713 = vmatpush1.bf16.msra.mxu1 %v2779_v2 }
  0xb0   :  { %1836 = vmatpush1.bf16.msra.mxu0 %v2782_v3  ;;  %1714 = vmatprep.subr.bf16.mxu1 %v2787_v4 }
  0xb1   :  { %1837 = vmatprep.subr.bf16.mxu0 %v2790_v5 }
  0xb3   :  { %1715 = vmatpush1.bf16.msra.mxu1 %v2785_v6 }
  0xb4   :  { %1838 = vmatpush1.bf16.msra.mxu0 %v2788_v7  ;;  %1716 = vmatprep.subr.bf16.mxu1 %v2793_v8 }
  0xb5   :  { %1839 = vmatprep.subr.bf16.mxu0 %v2796_v9 }
  0xb7   :  { %1717 = vmatpush1.bf16.msra.mxu1 %v2791_v10 }
  0xb8   :  { %1840 = vmatpush1.bf16.msra.mxu0 %v2794_v11  ;;  %1718 = vmatprep.subr.bf16.mxu1 %v2799_v12 }
  0xb9   :  { %1841 = vmatprep.subr.bf16.mxu0 %v2802_v13 }
  0xba   :  { %12 = vsyncpa [#allocation3], 0  ;;  %v2803_v18 = vld [vmem:[%s3896_s1 + $0x2f0] ss:$8 sps:$4 sm:$0xff]   ;;  %v32_v20 = vld [vmem:[%s3895_s0 + $0x20] sm:$0xff]  ;;  %vm2051_vm0 = vcmask 1043456  }
  0xbb   :  { %1719 = vmatpush1.bf16.msra.mxu1 %v2797_v14  ;;  %v2806_v19 = vld [vmem:[%s3896_s1 + $0x5f0] ss:$8 sps:$4 sm:$0xff]   ;;  %v2811_v22 = vld [vmem:[%s3896_s1 + $0x604] ss:$8 sps:$4 sm:$0xff]   ;;  %v48_v24 = vpack.c.bf16 %v32_v20, %v32_v20  ;;  %v2809_v26 = vld [vmem:[%s3896_s1 + $0x600] ss:$8 sps:$4 sm:$0xff]  }
  0xbc   :  { %1842 = vmatpush1.bf16.msra.mxu0 %v2800_v15  ;;  %v38_v21 = vld [vmem:[%s3895_s0 + $0x50] sm:$0xff]  ;;  %1720 = vmatprep.subr.bf16.mxu1 %v2805_v16  ;;  %v41_v23 = vld [vmem:[%s3895_s0 + $0x68] sm:$0xff]  ;;  %v40_v58 = vld [vmem:[%s3895_s0 + $0x60] sm:$0xff]  ;;  %v2950_v14 = vmov 0   ;;  %vm2047_vm1 = vcmask 588800   ;;  %vm2136_vm2 = vcmask 1040384  }
  0xbd   :  { %1843 = vmatprep.subr.bf16.mxu0 %v2808_v17  ;;  %v54_v25 = vpack.c.bf16 %v38_v21, %v38_v21  ;;  %v57_v27 = vpack.c.bf16 %v41_v23, %v41_v23  ;;  %v2814_v28 = vld [vmem:[%s3896_s1 + $0x614] ss:$8 sps:$4 sm:$0xff]   ;;  %v2812_v29 = vld [vmem:[%s3896_s1 + $0x610] ss:$8 sps:$4 sm:$0xff]   ;;  %v2817_v30 = vld [vmem:[%s3896_s1 + $0x624] ss:$8 sps:$4 sm:$0xff]   ;;  %v56_v61 = vpack.c.bf16 %v40_v58, %v40_v58 }
  0xbe   :  { %v2815_v31 = vld [vmem:[%s3896_s1 + $0x620] ss:$8 sps:$4 sm:$0xff]   ;;  %v2820_v32 = vld [vmem:[%s3896_s1 + $0x634] ss:$8 sps:$4 sm:$0xff]   ;;  %v2818_v33 = vld [vmem:[%s3896_s1 + $0x630] ss:$8 sps:$4 sm:$0xff]  }
  0xbf   :  { %1721 = vmatpush1.bf16.msra.mxu1 %v2803_v18  ;;  %v2823_v34 = vld [vmem:[%s3896_s1 + $0x644] ss:$8 sps:$4 sm:$0xff]   ;;  %v2821_v35 = vld [vmem:[%s3896_s1 + $0x640] ss:$8 sps:$4 sm:$0xff]   ;;  %v2826_v36 = vld [vmem:[%s3896_s1 + $0x654] ss:$8 sps:$4 sm:$0xff]  }
  0xc0   :  { %1844 = vmatpush1.bf16.msra.mxu0 %v2806_v19  ;;  %v2824_v37 = vld [vmem:[%s3896_s1 + $0x650] ss:$8 sps:$4 sm:$0xff]   ;;  %v2829_v38 = vld [vmem:[%s3896_s1 + $0x664] ss:$8 sps:$4 sm:$0xff]   ;;  %v2827_v39 = vld [vmem:[%s3896_s1 + $0x660] ss:$8 sps:$4 sm:$0xff]   ;;  %2055 = vmatprep.subr.bf16.mxu1 %v2950_v14 }
  0xc1   :  { %1854 = vmatprep.subr.bf16.mxu0 %v2811_v22  ;;  %v2832_v40 = vld [vmem:[%s3896_s1 + $0x674] ss:$8 sps:$4 sm:$0xff]   ;;  %v2830_v41 = vld [vmem:[%s3896_s1 + $0x670] ss:$8 sps:$4 sm:$0xff]   ;;  %v2835_v42 = vld [vmem:[%s3896_s1 + $0x684] ss:$8 sps:$4 sm:$0xff]  }
  0xc2   :  { %1723 = vmatmul.mubr.bf16.vlgmr.msra.gmra.mrb[0].mxu1 %v48_v24  ;;  %v2833_v43 = vld [vmem:[%s3896_s1 + $0x680] ss:$8 sps:$4 sm:$0xff]   ;;  %v2838_v44 = vld [vmem:[%s3896_s1 + $0x694] ss:$8 sps:$4 sm:$0xff]   ;;  %v2836_v45 = vld [vmem:[%s3896_s1 + $0x690] ss:$8 sps:$4 sm:$0xff]  }
  0xc3   :  { %1846 = vmatmul.mubr.bf16.vlgmr.msra.gmra.mrb[0].mxu0 %v54_v25  ;;  %v2841_v46 = vld [vmem:[%s3896_s1 + $0x6a4] ss:$8 sps:$4 sm:$0xff]   ;;  %v2839_v47 = vld [vmem:[%s3896_s1 + $0x6a0] ss:$8 sps:$4 sm:$0xff]   ;;  %v2844_v48 = vld [vmem:[%s3896_s1 + $0x6b4] ss:$8 sps:$4 sm:$0xff]  }
  0xc4   :  { %1855 = vmatpush1.bf16.msra.mxu0 %v2809_v26  ;;  %1886 = vmatprep.mubr.bf16.mxu0 %v57_v27  ;;  %v2842_v49 = vld [vmem:[%s3896_s1 + $0x6b0] ss:$8 sps:$4 sm:$0xff]   ;;  %v2847_v50 = vld [vmem:[%s3896_s1 + $0x6c4] ss:$8 sps:$4 sm:$0xff]   ;;  %v2845_v51 = vld [vmem:[%s3896_s1 + $0x6c0] ss:$8 sps:$4 sm:$0xff]  }
  0xc5   :  { %1856 = vmatprep.subr.bf16.mxu0 %v2814_v28  ;;  %v2850_v52 = vld [vmem:[%s3896_s1 + $0x6d4] ss:$8 sps:$4 sm:$0xff]   ;;  %v2848_v53 = vld [vmem:[%s3896_s1 + $0x6d0] ss:$8 sps:$4 sm:$0xff]   ;;  %v2853_v54 = vld [vmem:[%s3896_s1 + $0x6e4] ss:$8 sps:$4 sm:$0xff]  }
  0xc6   :  { %v2851_v55 = vld [vmem:[%s3896_s1 + $0x6e0] ss:$8 sps:$4 sm:$0xff]   ;;  %v2856_v56 = vld [vmem:[%s3896_s1 + $0x6f4] ss:$8 sps:$4 sm:$0xff]   ;;  %v2854_v57 = vld [vmem:[%s3896_s1 + $0x6f0] ss:$8 sps:$4 sm:$0xff]  }
  0xc7   :  { %v2859_v59 = vld [vmem:[%s3896_s1 + $0x704] ss:$8 sps:$4 sm:$0xff]   ;;  %v43_v60 = vld [vmem:[%s3895_s0 + $0x78] sm:$0xff]  ;;  %v2857_v62 = vld [vmem:[%s3896_s1 + $0x700] ss:$8 sps:$4 sm:$0xff]   ;;  %vm2952_vm3 = vmmov 0  }
  0xc8   :  { %1857 = vmatpush1.bf16.msra.mxu0 %v2812_v29  ;;  %v59_v63 = vpack.c.bf16 %v43_v60, %v43_v60  ;;  %v2862_v0 = vld [vmem:[%s3896_s1 + $0x714] ss:$8 sps:$4 sm:$0xff]   ;;  %v2860_v1 = vld [vmem:[%s3896_s1 + $0x710] ss:$8 sps:$4 sm:$0xff]   ;;  %v2865_v2 = vld [vmem:[%s3896_s1 + $0x724] ss:$8 sps:$4 sm:$0xff]  }
  0xc9   :  { %1858 = vmatprep.subr.bf16.mxu0 %v2817_v30  ;;  %v2863_v3 = vld [vmem:[%s3896_s1 + $0x720] ss:$8 sps:$4 sm:$0xff]   ;;  %v2868_v4 = vld [vmem:[%s3896_s1 + $0x734] ss:$8 sps:$4 sm:$0xff]   ;;  %v2866_v5 = vld [vmem:[%s3896_s1 + $0x730] ss:$8 sps:$4 sm:$0xff]  }
  0xca   :  { %v2871_v6 = vld [vmem:[%s3896_s1 + $0x744] ss:$8 sps:$4 sm:$0xff]   ;;  %v2869_v7 = vld [vmem:[%s3896_s1 + $0x740] ss:$8 sps:$4 sm:$0xff]   ;;  %v2874_v8 = vld [vmem:[%s3896_s1 + $0x754] ss:$8 sps:$4 sm:$0xff]  }
  0xcb   :  { %v2872_v9 = vld [vmem:[%s3896_s1 + $0x750] ss:$8 sps:$4 sm:$0xff]   ;;  %v2877_v10 = vld [vmem:[%s3896_s1 + $0x764] ss:$8 sps:$4 sm:$0xff]   ;;  %v2875_v11 = vld [vmem:[%s3896_s1 + $0x760] ss:$8 sps:$4 sm:$0xff]  }
  0xcc   :  { %1859 = vmatpush1.bf16.msra.mxu0 %v2815_v31  ;;  %v2880_v12 = vld [vmem:[%s3896_s1 + $0x774] ss:$8 sps:$4 sm:$0xff]   ;;  %v2905_v13 = vld [vmem:[%s3898_s3] sm:$0xff]   ;;  %v2906_v15 = vld [vmem:[%s3898_s3 + $0x8] sm:$0xff]   ;;  %vm2132_vm4 = vcmask 408576   ;;  %s2953_s28 = smov [#allocation2]  }
  0xcd   :  { %1860 = vmatprep.subr.bf16.mxu0 %v2820_v32  ;;  %2056 = vmatpush1.bf16.msra.mxu1 %v2905_v13  ;;  %v2878_v16 = vld [vmem:[%s3896_s1 + $0x770] ss:$8 sps:$4 sm:$0xff]   ;;  %v2883_v17 = vld [vmem:[%s3896_s1 + $0x784] ss:$8 sps:$4 sm:$0xff]   ;;  %v2881_v19 = vld [vmem:[%s3896_s1 + $0x780] ss:$8 sps:$4 sm:$0xff]  }
  0xce   :  { %2057 = vmatprep.subr.bf16.mxu1 %v2950_v14  ;;  %v2907_v18 = vld [vmem:[%s3898_s3 + $0x10] sm:$0xff]   ;;  %v2908_v21 = vld [vmem:[%s3898_s3 + $0x18] sm:$0xff]   ;;  %v2889_v23 = vld [vmem:[%s3896_s1 + $0x7a4] ss:$8 sps:$4 sm:$0xff]   ;;  %s2187_s29 = sshll.u32 %s2953_s28, 4  ;;  %s2188_s29 = int_to_ptr.vmem [resolvable:$true] %s2187_s29 }
  0xcf   :  { %v2886_v20 = vld [vmem:[%s3896_s1 + $0x794] ss:$8 sps:$4 sm:$0xff]   ;;  %v2884_v22 = vld [vmem:[%s3896_s1 + $0x790] ss:$8 sps:$4 sm:$0xff]   ;;  %v2909_v24 = vld [vmem:[%s3898_s3 + $0x20] sm:$0xff]   ;;  %p2931_p1 = scmp.lt.s32.totalorder %s2188_s29, %s2188_s29 }
  0xd0   :  { %1861 = vmatpush1.bf16.msra.mxu0 %v2818_v33  ;;  %v2887_v25 = vld [vmem:[%s3896_s1 + $0x7a0] ss:$8 sps:$4 sm:$0xff]   ;;  %v2892_v26 = vld [vmem:[%s3896_s1 + $0x7b4] ss:$8 sps:$4 sm:$0xff]   ;;  %v2890_v28 = vld [vmem:[%s3896_s1 + $0x7b0] ss:$8 sps:$4 sm:$0xff]  }
  0xd1   :  { %1862 = vmatprep.subr.bf16.mxu0 %v2823_v34  ;;  %2058 = vmatpush1.bf16.msra.mxu1 %v2906_v15  ;;  %v2910_v27 = vld [vmem:[%s3898_s3 + $0x28] sm:$0xff]   ;;  %v2911_v30 = vld [vmem:[%s3898_s3 + $0x30] sm:$0xff]   ;;  %v2912_v33 = vld [vmem:[%s3898_s3 + $0x38] sm:$0xff]  }
  0xd2   :  { %2059 = vmatprep.subr.bf16.mxu1 %v2950_v14  ;;  %v2895_v29 = vld [vmem:[%s3896_s1 + $0x7c4] ss:$8 sps:$4 sm:$0xff]   ;;  %v2893_v31 = vld [vmem:[%s3896_s1 + $0x7c0] ss:$8 sps:$4 sm:$0xff]   ;;  %v2898_v32 = vld [vmem:[%s3896_s1 + $0x7d4] ss:$8 sps:$4 sm:$0xff]  }
  0xd3   :  { %v2896_v34 = vld [vmem:[%s3896_s1 + $0x7d0] ss:$8 sps:$4 sm:$0xff]  }
  0xd4   :  { %1863 = vmatpush1.bf16.msra.mxu0 %v2821_v35  ;;  %v2901_v35 = vld [vmem:[%s3896_s1 + $0x7e4] ss:$8 sps:$4 sm:$0xff]  }
  0xd5   :  { %1864 = vmatprep.subr.bf16.mxu0 %v2826_v36  ;;  %2060 = vmatpush1.bf16.msra.mxu1 %v2907_v18  ;;  %v2913_v36 = vld [vmem:[%s3898_s3 + $0x40] sm:$0xff]  }
  0xd6   :  { %2061 = vmatprep.subr.bf16.mxu1 %v2950_v14 }
  0xd8   :  { %1865 = vmatpush1.bf16.msra.mxu0 %v2824_v37  ;;  %v2899_v37 = vld [vmem:[%s3896_s1 + $0x7e0] ss:$8 sps:$4 sm:$0xff]  }
  0xd9   :  { %1866 = vmatprep.subr.bf16.mxu0 %v2829_v38  ;;  %2062 = vmatpush1.bf16.msra.mxu1 %v2908_v21  ;;  %v2904_v38 = vld [vmem:[%s3896_s1 + $0x7f4] ss:$8 sps:$4 sm:$0xff]  }
  0xda   :  { %2063 = vmatprep.subr.bf16.mxu1 %v2950_v14 }
  0xdc   :  { %1867 = vmatpush1.bf16.msra.mxu0 %v2827_v39  ;;  %v2902_v39 = vld [vmem:[%s3896_s1 + $0x7f0] ss:$8 sps:$4 sm:$0xff]  }
  0xdd   :  { %1868 = vmatprep.subr.bf16.mxu0 %v2832_v40  ;;  %2064 = vmatpush1.bf16.msra.mxu1 %v2909_v24  ;;  %v42_v40 = vld [vmem:[%s3895_s0 + $0x70] sm:$0xff] }
  0xde   :  { %2065 = vmatprep.subr.bf16.mxu1 %v2950_v14 }
  0xe0   :  { %1869 = vmatpush1.bf16.msra.mxu0 %v2830_v41  ;;  %v58_v41 = vpack.c.bf16 %v42_v40, %v42_v40 }
  0xe1   :  { %1870 = vmatprep.subr.bf16.mxu0 %v2835_v42  ;;  %2066 = vmatpush1.bf16.msra.mxu1 %v2910_v27 }
  0xe2   :  { %2067 = vmatprep.subr.bf16.mxu1 %v2950_v14 }
  0xe4   :  { %1871 = vmatpush1.bf16.msra.mxu0 %v2833_v43 }
  0xe5   :  { %1872 = vmatprep.subr.bf16.mxu0 %v2838_v44  ;;  %2068 = vmatpush1.bf16.msra.mxu1 %v2911_v30  ;;  %v2914_v44 = vld [vmem:[%s3898_s3 + $0x48] sm:$0xff]  }
  0xe6   :  { %2069 = vmatprep.subr.bf16.mxu1 %v2950_v14 }
  0xe8   :  { %1873 = vmatpush1.bf16.msra.mxu0 %v2836_v45 }
  0xe9   :  { %1874 = vmatprep.subr.bf16.mxu0 %v2841_v46  ;;  %2070 = vmatpush1.bf16.msra.mxu1 %v2912_v33 }
  0xea   :  { %2071 = vmatprep.subr.bf16.mxu1 %v2950_v14 }
  0xec   :  { %1875 = vmatpush1.bf16.msra.mxu0 %v2839_v47  ;;  %v2915_v47 = vld [vmem:[%s3898_s3 + $0x50] sm:$0xff]  }
  0xed   :  { %1876 = vmatprep.subr.bf16.mxu0 %v2844_v48  ;;  %2072 = vmatpush1.bf16.msra.mxu1 %v2913_v36  ;;  %v2916_v48 = vld [vmem:[%s3898_s3 + $0x58] sm:$0xff]  }
  0xee   :  { %2073 = vmatprep.subr.bf16.mxu1 %v2950_v14 }
  0xf0   :  { %1877 = vmatpush1.bf16.msra.mxu0 %v2842_v49  ;;  %v2917_v49 = vld [vmem:[%s3898_s3 + $0x60] ss:$0 sps:$4 sm:$0xff]  }
  0xf1   :  { %1878 = vmatprep.subr.bf16.mxu0 %v2847_v50  ;;  %2074 = vmatpush1.bf16.msra.mxu1 %v2914_v44  ;;  %v2053_v50 = vsel %vm2051_vm0, %v2917_v49, 0 }
  0xf2   :  { %2075 = vmatprep.subr.bf16.mxu1 %v2950_v14 }
  0xf4   :  { %1879 = vmatpush1.bf16.msra.mxu0 %v2845_v51  ;;  %v2951_v51 = vmov 0.0  }
  0xf5   :  { %1880 = vmatprep.subr.bf16.mxu0 %v2850_v52  ;;  %2076 = vmatpush1.bf16.msra.mxu1 %v2915_v47  ;;  %v318_v52 = vlaneseq }
  0xf6   :  { %2077 = vmatprep.subr.bf16.mxu1 %v2950_v14 }
  0xf8   :  { %1881 = vmatpush1.bf16.msra.mxu0 %v2848_v53  ;;  %v319_v53 = vshrl.u32 %v318_v52, 7 }
  0xf9   :  { %1882 = vmatprep.subr.bf16.mxu0 %v2853_v54  ;;  %2078 = vmatpush1.bf16.msra.mxu1 %v2916_v48 }
  0xfa   :  { %2079 = vmatprep.subr.bf16.mxu1 %v2950_v14  ;;  %v320_v54 = vsub.s32 0, %v319_v53 }
  0xfc   :  { %1883 = vmatpush1.bf16.msra.mxu0 %v2851_v55  ;;  %v316_v55 = vld [vmem:[%s3897_s2] sm:$0x3] }
  0xfd   :  { %1884 = vmatprep.subr.bf16.mxu0 %v2856_v56  ;;  %2080 = vmatpush1.bf16.msra.mxu1 %v2053_v50  ;;  %v324_v56 = vsub.s32 1, %v319_v53 }
  0xfe   :  { %2477 = vmatprep.subr.bf16.mxu1 %v2951_v51 }
  0xff   :  { %v325_v58 = vrot.slane %v316_v55, %v324_v56 }
 0x100   :  { %1885 = vmatpush1.bf16.msra.mxu0 %v2854_v57  ;;  %v321_v57 = vrot.slane %v316_v55, %v320_v54 }
 0x101   :  { %1895 = vmatprep.subr.bf16.mxu0 %v2859_v59 }
 0x103   :  { %1887 = vmatmul.mubr.bf16.vlgmr.msra.gmra.mrb[0].mxu0 %v56_v61 }
 0x104   :  { %1896 = vmatpush1.bf16.msra.mxu0 %v2857_v62  ;;  %1927 = vmatprep.mubr.bf16.mxu0 %v59_v63 }
 0x105   :  { %1897 = vmatprep.subr.bf16.mxu0 %v2862_v0 }
 0x108   :  { %1898 = vmatpush1.bf16.msra.mxu0 %v2860_v1 }
 0x109   :  { %1899 = vmatprep.subr.bf16.mxu0 %v2865_v2 }
 0x10c   :  { %1900 = vmatpush1.bf16.msra.mxu0 %v2863_v3 }
 0x10d   :  { %1901 = vmatprep.subr.bf16.mxu0 %v2868_v4 }
 0x110   :  { %1902 = vmatpush1.bf16.msra.mxu0 %v2866_v5 }
 0x111   :  { %1903 = vmatprep.subr.bf16.mxu0 %v2871_v6  ;;  %v2918_v6 = vld [vmem:[%s3900_s5] sm:$0xff]  }
 0x114   :  { %1904 = vmatpush1.bf16.msra.mxu0 %v2869_v7 }
 0x115   :  { %1905 = vmatprep.subr.bf16.mxu0 %v2874_v8  ;;  %v2919_v8 = vld [vmem:[%s3900_s5 + $0x8] sm:$0xff]  }
 0x118   :  { %1906 = vmatpush1.bf16.msra.mxu0 %v2872_v9  ;;  %v2920_v9 = vld [vmem:[%s3900_s5 + $0x10] sm:$0xff]  }
 0x119   :  { %1907 = vmatprep.subr.bf16.mxu0 %v2877_v10  ;;  %v2921_v10 = vld [vmem:[%s3900_s5 + $0x18] ss:$0 sps:$4 sm:$0x11]  }
 0x11c   :  { %1908 = vmatpush1.bf16.msra.mxu0 %v2875_v11  ;;  %v2138_v11 = vsel %vm2136_vm2, %v2921_v10, 0 }
 0x11d   :  { %1909 = vmatprep.subr.bf16.mxu0 %v2880_v12  ;;  %v2451_v12 = vld [vmem:[%s3899_s4] ss:$0 sm:$0xff]  ;;  %s2926_s4 = scalar_lea.vmem %s2188_s29, 128 }
 0x11e   :  { %p2927_p0 = scmp.ne.s32.totalorder %s2188_s29, %s2926_s4  ;;  %p2932_p2 = scmp.lt.s32.totalorder %s2926_s4, %s2926_s4 }
 0x120   :  { %1910 = vmatpush1.bf16.msra.mxu0 %v2878_v16  ;;  %p2933_p3 = por %p2932_p2, %p2931_p1 }
 0x121   :  { %1911 = vmatprep.subr.bf16.mxu0 %v2883_v17 }
 0x122   :  { %p2934_p4 = pnand %p2933_p3, %p2927_p0 }
 0x124   :  { %1912 = vmatpush1.bf16.msra.mxu0 %v2881_v19 }
 0x125   :  { %1913 = vmatprep.subr.bf16.mxu0 %v2886_v20  ;;  %v2466_v20 = vld [vmem:[%s3901_s6] ss:$0 sm:$0xff] }
 0x128   :  { %1914 = vmatpush1.bf16.msra.mxu0 %v2884_v22 }
 0x129   :  { %1915 = vmatprep.subr.bf16.mxu0 %v2889_v23 }
 0x12c   :  { %1916 = vmatpush1.bf16.msra.mxu0 %v2887_v25 }
 0x12d   :  { %1917 = vmatprep.subr.bf16.mxu0 %v2892_v26 }
 0x130   :  { %1918 = vmatpush1.bf16.msra.mxu0 %v2890_v28 }
 0x131   :  { %1919 = vmatprep.subr.bf16.mxu0 %v2895_v29 }
 0x134   :  { %1920 = vmatpush1.bf16.msra.mxu0 %v2893_v31 }
 0x135   :  { %1921 = vmatprep.subr.bf16.mxu0 %v2898_v32 }
 0x138   :  { %1922 = vmatpush1.bf16.msra.mxu0 %v2896_v34 }
 0x139   :  { %1923 = vmatprep.subr.bf16.mxu0 %v2901_v35 }
 0x13c   :  { %1924 = vmatpush1.bf16.msra.mxu0 %v2899_v37 }
 0x13d   :  { %1925 = vmatprep.subr.bf16.mxu0 %v2904_v38 }
 0x140   :  { %1926 = vmatpush1.bf16.msra.mxu0 %v2902_v39 }
 0x143   :  { %1928 = vmatmul.mubr.bf16.vlgmr.msra.gmra.mrb[0].mxu0 %v58_v41 }
 0x195   :  { %v1724_v42 = vpop.f32.mrb[0].mxu1 }
 0x196   :  { %v1726_v43 = vpop.f32.mrb[1].mxu1  ;;  %v2489_v59 = vadd.f32 %v1724_v42, %v321_v57 }
 0x197   :  { %v1728_v45 = vpop.f32.mrb[2].mxu1  ;;  %v2491_v60 = vadd.f32 %v1726_v43, %v325_v58 }
 0x198   :  { %v1729_v46 = vpop.f32.mrb[3].mxu1 }
 0x216   :  { %v1929_v61 = vpop.f32.mrb[0].mxu0 }
 0x217   :  { %v2490_v62 = vadd.f32 %v2489_v59, %v1929_v61  ;;  %v1931_v63 = vpop.f32.mrb[1].mxu0 }
 0x218   :  { %v2492_v0 = vadd.f32 %v2491_v60, %v1931_v63  ;;  %v1933_v1 = vpop.f32.mrb[2].mxu0 }
 0x219   :  { %2922 = vtanh.f32 %v2490_v62  ;;  %v1934_v2 = vpop.f32.mrb[3].mxu0 }
 0x21a   :  { %2924 = vtanh.f32 %v2492_v0 }
 0x223   :  { %v2923_v3 = vpop.eup %2922 }
 0x224   :  { %v2925_v4 = vpop.eup %2924  ;;  %v1938_v7 = vpack.c.bf16 %v2923_v3, %v2923_v3 }
 0x225   :  { %v1939_v5 = vpack.c.bf16 %v2925_v4, %v2925_v4 }
 0x227   :  { %2465 = vmatprep.mubr.msk.bf16.mxu1 %vm2047_vm1, %v1939_v5 }
 0x228   :  { %2088 = vmatmul.mubr.bf16.vlgmr.msra.gmra.mrb[4].mxu1 %v1938_v7 }
 0x229   :  { %2478 = vmatpush3.bf16.msra.mxu1 %v2918_v6  ;;  %2485 = vmatprep.mubr.msk.bf16.mxu1 %vm2952_vm3, %v2951_v51 }
 0x22a   :  { %2479 = vmatprep.subr.bf16.mxu1 %v2951_v51 }
 0x22d   :  { %2480 = vmatpush3.bf16.msra.mxu1 %v2919_v8 }
 0x22e   :  { %2481 = vmatprep.subr.bf16.mxu1 %v2951_v51 }
 0x231   :  { %2482 = vmatpush3.bf16.msra.mxu1 %v2920_v9 }
 0x232   :  { %2483 = vmatprep.subr.bf16.mxu1 %v2951_v51 }
 0x235   :  { %2484 = vmatpush3.bf16.msra.mxu1 %v2138_v11 }
 0x2fb   :  { %v2089_v13 = vpop.f32.mrb[4].mxu1 }
 0x2fc   :  { %v2090_v14 = vadd.f32 %v2451_v12, %v2089_v13  ;;  %v2091_v15 = vpop.f32.mrb[5].mxu1 }
 0x2fd   :  { %v2092_v16 = vpop.f32.mrb[6].mxu1 }
 0x2fe   :  { %v2095_v17 = vmax.f32 %v2090_v14, 0.0  ;;  %v2093_v18 = vpop.f32.mrb[7].mxu1 }
 0x300   :  { %v2096_v19 = vpack.c.bf16 %v2095_v17, %v2095_v17 }
 0x302   :  { %2486 = vmatmul.mubr.msk.bf16.vlgmr.msra.gmra.mrb[8].mxu1 %vm2132_vm4, %v2096_v19 }
 0x3d5   :  { %v2174_v21 = vpop.f32.mrb[8].mxu1 }
 0x3d6   :  { %v2175_v22 = vadd.f32 %v2466_v20, %v2174_v21  ;;  %v2487_v23 = vpop.f32.mrb[9].mxu1 }
 0x3d7   :  { %v2177_v24 = vpop.f32.mrb[10].mxu1 }
 0x3d8   :  { %2180 = vst [vmem:[#allocation2] sm:$0xff] %v2175_v22  ;;  %v2488_v25 = vpop.f32.mrb[11].mxu1 }
 0x3d9   :  { %2937 = shalt.err (!%p2934_p4)
}
 0x3da   :  { %s2938_s6 = scalar_lea.hbm %s3902_s7, 128 }
 0x3db   :  { %p2939_p5 = scmp.ne.s32.totalorder %s3902_s7, %s2938_s6  ;;  %p2942_p6 = scmp.lt.u32.totalorder %s2938_s6, %s3902_s7 }
 0x3dd   :  { %p2944_p7 = pnand %p2942_p6, %p2939_p5 }
 0x3df   :  { %2947 = shalt.err (!%p2944_p7)
}
 0x3e0   :  { %2190 = dma.vmem_to_hbm [thread:$0]  %s2188_s29, 128, %s3902_s7, [#allocation3]  }
 0x3e1   :  { %2948 = dma.done.wait [#allocation3], 128  }
 0x3e2   :  { %2949 = vsyncadd [#allocation3], 4294967168 }
 0x3e3   :  { %2194 = vsyncpa [#allocation3], 1 }

</bundles_post_ra>
